<compile_context>
chip_gen: v7x
topology: tpu7x:2x2x1
jax: 0.10.0
libtpu: 0.0.40
codegen_flags: <defaults>
</compile_context>

<pallas_src>
import jax
import jax.numpy as jnp
from jax.experimental import pallas as pl
from jax.experimental.pallas import tpu as pltpu


_TARGET_BLOCK_BYTES = 2 * 1024 * 1024    # ~2 MiB per input block (dtype-adaptive)
_VMEM_LIMIT_BYTES = 32 * 1024 * 1024     # explicit, headroom on v5e/v6e and v7x (64 MiB)
_LANE_CANDIDATES = (512, 256, 128)       # lane-dense column counts (multiples of 128)


def _cdiv(a, b):
    return -(-a // b)


def _round_up(x, m):
    return _cdiv(x, m) * m


def _num_tensorcores():
    """Best-effort TensorCore count (2 on v7x / megacore chips). Defaults to 1."""
    try:
        info = pltpu.get_tpu_info()
    except Exception:
        return 1
    for attr in ("num_tensorcores", "tensorcore_count", "num_cores",
                 "cores_per_chip", "core_count"):
        v = getattr(info, attr, None)
        if isinstance(v, int) and v >= 1:
            return v
    return 1


def _choose_cols(total):
    """Largest lane-dense column count that divides total -> pad-free reshape."""
    for c in _LANE_CANDIDATES:
        if total % c == 0:
            return c, 0
    # Rare ragged fallback: tiny pad (< 128 elements) to the next lane multiple.
    # TODO(synk): could be removed entirely by handling the <128-element tail in
    # plain JAX, at the cost of an XLA prefix-slice copy; the tiny pad is cheaper.
    c = 128
    return c, _round_up(total, c) - total


def _choose_tile_rows(rows, cols, itemsize, n_chunks):
    """Balanced, sublane-aligned tile rows keeping each block <= ~2 MiB."""
    if rows <= 8:
        return rows                                       # block == full array dim
    max_tr = max(8, (_TARGET_BLOCK_BYTES // (cols * itemsize)) // 8 * 8)
    per_chunk = _cdiv(rows, n_chunks)
    n_blk = _cdiv(per_chunk, max_tr)
    tr = _round_up(_cdiv(per_chunk, n_blk), 8)            # even-ish split
    if tr > rows:                                         # keep block <= array rows
        tr = max(8, (rows // 8) * 8)
    return min(tr, max_tr)


def _make_kernel(rows, tile_rows, cols, blocks_per_chunk, need_mask):
    def kernel(src_ref, tgt_ref, out_ref, acc_ref):
        i = pl.program_id(1)

        @pl.when(i == 0)
        def _():
            acc_ref[...] = jnp.zeros_like(acc_ref)

        # Widen BEFORE the subtract (matches f32 reference; exact no-op for f32
        # inputs).  Steady state is pure VPU elementwise accumulate.
        d = src_ref[...].astype(jnp.float32) - tgt_ref[...].astype(jnp.float32)
        sq = d * d

        if need_mask:
            # Ragged tail handled in-kernel: zero contributions from logical
            # rows >= rows.  Undefined data in the OOB part of a partial block
            # is select-ed away (never multiplied in), so no input padding is
            # needed.  Compare+select is free under the HBM bound.
            blk = pl.program_id(0) * blocks_per_chunk + i
            row_ids = blk * tile_rows + jax.lax.broadcasted_iota(
                jnp.int32, (tile_rows, cols), 0)
            sq = jnp.where(row_ids < rows, sq, 0.0)

        acc_ref[...] += sq

        # One cross-lane reduce per chunk (free under the memory bound); the
        # per-chunk result is broadcast into a single (8,128) vreg output -> no
        # partial-sum slab writeback / re-read by a follow-up kernel.
        @pl.when(i == pl.num_programs(1) - 1)
        def _():
            s = jnp.sum(acc_ref[...])
            out_ref[...] = jnp.broadcast_to(s, (1, 8, 128))

    return kernel


def custom_eu_loss(src_sen_emb, tgt_sen_emb, emb_dim, n_chunks=None):
    """Pallas equivalent of custom_eu_loss.forward -> scalar f32 loss."""
    total = src_sen_emb.size
    assert tgt_sen_emb.size == total
    assert total % emb_dim == 0
    n_rows = total // emb_dim                  # == dis.size(0) in the PyTorch module

    # ---- lane-dense (rows, C) view of the flat element stream, pad-free ------
    cols, pad = _choose_cols(total)
    src_flat = src_sen_emb.reshape(-1)
    tgt_flat = tgt_sen_emb.reshape(-1)
    if pad:
        # Rare fallback (< 128 zero elements); padded diff is 0 -> loss unchanged.
        src_flat = jnp.pad(src_flat, (0, pad))
        tgt_flat = jnp.pad(tgt_flat, (0, pad))
    rows = (total + pad) // cols
    src2 = src_flat.reshape(rows, cols)
    tgt2 = tgt_flat.reshape(rows, cols)
    itemsize = src2.dtype.itemsize

    # ---- chunking (2-way only where a 2nd TensorCore exists) + adaptive tiles -
    if n_chunks is None:
        n_chunks = 2 if _num_tensorcores() >= 2 else 1
    tile_rows = _choose_tile_rows(rows, cols, itemsize, n_chunks)
    blocks_total = _cdiv(rows, tile_rows)
    n_chunks = max(1, min(n_chunks, blocks_total))
    blocks_per_chunk = _cdiv(blocks_total, n_chunks)
    rows_covered = n_chunks * blocks_per_chunk * tile_rows
    need_mask = rows_covered != rows
    last_block = blocks_total - 1

    def in_map(p, i):
        # Clamp so every DMA targets a real block; overflow iterations of the
        # second chunk are fully masked away in the kernel.
        return (jnp.minimum(p * blocks_per_chunk + i, last_block), 0)

    kernel = _make_kernel(rows, tile_rows, cols, blocks_per_chunk, need_mask)

    cost = pl.CostEstimate(
        flops=3 * total,                               # sub + mul + add per element
        transcendentals=0,
        bytes_accessed=2 * total * itemsize + n_chunks * 8 * 128 * 4,
    )

    partials = pl.pallas_call(
        kernel,
        out_shape=jax.ShapeDtypeStruct((n_chunks, 8, 128), jnp.float32),
        grid_spec=pltpu.PrefetchScalarGridSpec(
            num_scalar_prefetch=0,
            grid=(n_chunks, blocks_per_chunk),
            in_specs=[
                pl.BlockSpec((tile_rows, cols), in_map),
                pl.BlockSpec((tile_rows, cols), in_map),
            ],
            out_specs=pl.BlockSpec((1, 8, 128), lambda p, i: (p, 0, 0)),
            scratch_shapes=[pltpu.VMEM((tile_rows, cols), jnp.float32)],
        ),
        compiler_params=pltpu.CompilerParams(
            dimension_semantics=("parallel", "arbitrary"),
            vmem_limit_bytes=_VMEM_LIMIT_BYTES,
        ),
        cost_estimate=cost,
    )(src2, tgt2)

    # Each chunk's full sum was broadcast into its (8,128) block; pick one slot.
    chunk_sums = partials[:, 0, 0]
    return jnp.sum(chunk_sums) * (100.0 / n_rows)


def _reference(src, tgt, emb_dim):
    ans = (src - tgt).reshape(-1, 1, emb_dim)
    dis = jnp.einsum("bij,bkj->bik", ans, ans).reshape(-1)
    return jnp.sum(100.0 * dis / dis.shape[0])


if __name__ == "__main__":
    key = jax.random.PRNGKey(0)
    keys = jax.random.split(key, 4)

    cases = [
        (8, 32),      # tiny exact-fit single block (module's toy shape)
        (100, 64),    # ragged row count -> masked partial final block, no padding
        (4096, 300),  # multi-block streamed reduction (divisible by 512, no pad)
        (50, 300),    # total not a multiple of 128 -> tiny pad fallback + mask
    ]
    for idx, (n_sent, emb_dim) in enumerate(cases):
        k1, k2 = jax.random.split(keys[idx], 2)
        src = jax.random.normal(k1, (n_sent, emb_dim), dtype=jnp.float32)
        tgt = jax.random.normal(k2, (n_sent, emb_dim), dtype=jnp.float32)
        loss = jax.block_until_ready(custom_eu_loss(src, tgt, emb_dim))
        ref = _reference(src, tgt, emb_dim)
        assert jnp.allclose(loss, ref, rtol=1e-4, atol=1e-3), (
            (n_sent, emb_dim), float(loss), float(ref))

    print("KERNEL_OK")
</pallas_src>

<mosaic_0001>
module attributes {stable_mosaic.version = 11 : i64} {
  func.func @kernel(%arg0: i32, %arg1: i32, %arg2: memref<1x256xf32, #tpu.memory_space<vmem>>, %arg3: memref<1x256xf32, #tpu.memory_space<vmem>>, %arg4: memref<1x8x128xf32, #tpu.memory_space<vmem>>, %arg5: memref<1x256xf32, #tpu.memory_space<vmem>>) attributes {dimension_semantics = [#tpu.dimension_semantics<parallel>, #tpu.dimension_semantics<arbitrary>], iteration_bounds = array<i64: 1, 1>, scalar_prefetch = 0 : i64, scratch_operands = 1 : i64, tpu.core_type = #tpu.core_type<tc>, window_params = [{transform_indices = @transform_0, window_bounds = array<i64: 1, 256>}, {transform_indices = @transform_1, window_bounds = array<i64: 1, 256>}, {transform_indices = @transform_2, window_bounds = array<i64: 1, 8, 128>}]} {
    %c0_i32 = arith.constant 0 : i32
    %0 = arith.cmpi eq, %arg1, %c0_i32 : i32
    %1 = arith.extui %0 : i1 to i32
    %c0_i32_0 = arith.constant 0 : i32
    %2 = arith.cmpi ne, %1, %c0_i32_0 : i32
    scf.if %2 {
      %cst = arith.constant 0.000000e+00 : f32
      %13 = vector.broadcast %cst : f32 to vector<1x256xf32>
      %c0_10 = arith.constant 0 : index
      %c0_11 = arith.constant 0 : index
      %14 = vector.load %arg5[%c0_10, %c0_11] : memref<1x256xf32, #tpu.memory_space<vmem>>, vector<1x256xf32>
      tpu.vector_store %arg5[%c0_10, %c0_11], %13 {strides = array<i32>} : memref<1x256xf32, #tpu.memory_space<vmem>>, vector<1x256xf32>,
    } else {
    }
    %c0 = arith.constant 0 : index
    %c0_1 = arith.constant 0 : index
    %3 = vector.load %arg2[%c0, %c0_1] : memref<1x256xf32, #tpu.memory_space<vmem>>, vector<1x256xf32>
    %c0_2 = arith.constant 0 : index
    %c0_3 = arith.constant 0 : index
    %4 = vector.load %arg3[%c0_2, %c0_3] : memref<1x256xf32, #tpu.memory_space<vmem>>, vector<1x256xf32>
    %5 = arith.subf %3, %4 : vector<1x256xf32>
    %6 = arith.mulf %5, %5 : vector<1x256xf32>
    %c0_4 = arith.constant 0 : index
    %c0_5 = arith.constant 0 : index
    %7 = vector.load %arg5[%c0_4, %c0_5] : memref<1x256xf32, #tpu.memory_space<vmem>>, vector<1x256xf32>
    %8 = arith.addf %7, %6 : vector<1x256xf32>
    %c0_6 = arith.constant 0 : index
    %c0_7 = arith.constant 0 : index
    %9 = vector.load %arg5[%c0_6, %c0_7] : memref<1x256xf32, #tpu.memory_space<vmem>>, vector<1x256xf32>
    tpu.vector_store %arg5[%c0_6, %c0_7], %8 {strides = array<i32>} : memref<1x256xf32, #tpu.memory_space<vmem>>, vector<1x256xf32>,
    %c0_i32_8 = arith.constant 0 : i32
    %10 = arith.cmpi eq, %arg1, %c0_i32_8 : i32
    %11 = arith.extui %10 : i1 to i32
    %c0_i32_9 = arith.constant 0 : i32
    %12 = arith.cmpi ne, %11, %c0_i32_9 : i32
    scf.if %12 {
      %c0_10 = arith.constant 0 : index
      %c0_11 = arith.constant 0 : index
      %13 = vector.load %arg5[%c0_10, %c0_11] : memref<1x256xf32, #tpu.memory_space<vmem>>, vector<1x256xf32>
      %14 = vector.shape_cast %13 : vector<1x256xf32> to vector<1x1x256xf32>
      %cst = arith.constant dense<0.000000e+00> : vector<1xf32>
      %15 = vector.multi_reduction <add>, %14, %cst [1, 2] : vector<1x1x256xf32> to vector<1xf32>
      %16 = vector.shape_cast %15 : vector<1xf32> to vector<1x1x1xf32>
      %17 = vector.extract %16[0, 0, 0] : f32 from vector<1x1x1xf32>
      %18 = vector.broadcast %17 : f32 to vector<1x8x128xf32>
      %c0_12 = arith.constant 0 : index
      %c0_13 = arith.constant 0 : index
      %c0_14 = arith.constant 0 : index
      %19 = vector.load %arg4[%c0_12, %c0_13, %c0_14] : memref<1x8x128xf32, #tpu.memory_space<vmem>>, vector<1x8x128xf32>
      tpu.vector_store %arg4[%c0_12, %c0_13, %c0_14], %18 {strides = array<i32>} : memref<1x8x128xf32, #tpu.memory_space<vmem>>, vector<1x8x128xf32>,
    } else {
    }
    return
  }
  func.func @transform_0(%arg0: i32, %arg1: i32) -> (i32, i32) {
    %c1_i32 = arith.constant 1 : i32
    %0 = arith.muli %arg0, %c1_i32 : i32
    %1 = arith.addi %0, %arg1 : i32
    %c0_i32 = arith.constant 0 : i32
    %2 = arith.minsi %1, %c0_i32 : i32
    %c0_i32_0 = arith.constant 0 : i32
    %c0_i32_1 = arith.constant 0 : i32
    return %2, %c0_i32_0 : i32, i32
  }
  func.func @transform_1(%arg0: i32, %arg1: i32) -> (i32, i32) {
    %c1_i32 = arith.constant 1 : i32
    %0 = arith.muli %arg0, %c1_i32 : i32
    %1 = arith.addi %0, %arg1 : i32
    %c0_i32 = arith.constant 0 : i32
    %2 = arith.minsi %1, %c0_i32 : i32
    %c0_i32_0 = arith.constant 0 : i32
    %c0_i32_1 = arith.constant 0 : i32
    return %2, %c0_i32_0 : i32, i32
  }
  func.func @transform_2(%arg0: i32, %arg1: i32) -> (i32, i32, i32) {
    %c0_i32 = arith.constant 0 : i32
    %c0_i32_0 = arith.constant 0 : i32
    %c0_i32_1 = arith.constant 0 : i32
    return %arg0, %c0_i32, %c0_i32_0 : i32, i32, i32
  }
}

</mosaic_0001>

<bundles_post_ra>
// kernel: tpu_custom_call.1
= control target key start
LH: loop header
LB: loop body
LE: loop exit
PB: predicated region body
PF: predicated region fallthrough
CT: control target
= control target key end

     0   :  { %7 = vsyncpa [#allocation4], 0  ;;  %s231_s0 = inlined_call_operand.hbm [shape: f32[1,256], index: 0, kind: input, shape index: {}]   ;;  %s232_s1 = inlined_call_operand.vmem [shape: f32[1,256], index: 1, kind: input, shape index: {}]   ;;  %s233_s2 = inlined_call_operand.hbm [shape: f32[1,8,128], index: 2, kind: output, shape index: {}]  }
   0x1   :  { %8 = vsyncpa [#allocation5], 0  ;;  %s186_s9 = smov [#allocation3]   ;;  %s138_s13 = scalar_lea.hbm %s231_s0, 32 }
   0x2   :  { %s21_s10 = sshll.u32 %s186_s9, 4  ;;  %p139_p0 = scmp.ne.s32.totalorder %s231_s0, %s138_s13  ;;  %s22_s10 = int_to_ptr.vmem [resolvable:$true] %s21_s10 }
   0x3   :  { %p142_p1 = scmp.lt.u32.totalorder %s138_s13, %s231_s0 }
   0x5   :  { %p144_p2 = pnand %p142_p1, %p139_p0 }
   0x7   :  { %147 = shalt.err (!%p144_p2)
}
   0x8   :  { %s148_s18 = scalar_lea.vmem %s22_s10, 32  ;;  %p153_p4 = scmp.lt.s32.totalorder %s22_s10, %s22_s10 }
   0x9   :  { %p149_p3 = scmp.ne.s32.totalorder %s22_s10, %s148_s18  ;;  %p154_p5 = scmp.lt.s32.totalorder %s148_s18, %s148_s18 }
   0xb   :  { %p155_p6 = por %p154_p5, %p153_p4 }
   0xd   :  { %p156_p7 = pnand %p155_p6, %p149_p3 }
   0xf   :  { %159 = shalt.err (!%p156_p7)
}
  0x10   :  { %24 = dma.hbm_to_vmem [thread:$0]  %s231_s0, 32, %s22_s10, [#allocation4]  }
  0x11   :  { %182 = dma.done.wait [#allocation4], 32  }
  0x12   :  { %183 = vsyncadd [#allocation4], 4294967264  ;;  %v64_v0 = vlaneseq  ;;  %v187_v1 = vmov 0.0   ;;  %v69_v2 = vld [vmem:[#allocation3] sm:$0x3]  ;;  %vm95_vm1 = vcmask 1040384  }
  0x13   :  { %v70_v3 = vld [vmem:[%s232_s1] sm:$0x3]  ;;  %s188_s0 = smov [#allocation6]  }
  0x14   :  { %vm66_vm0 = vcmp.lt.s32.totalorder %v64_v0, 256  ;;  %v71_v4 = vsub.f32 %v69_v2, %v70_v3  ;;  %v86_v8 = vshrl.u32 %v64_v0, 7  ;;  %s116_s1 = sshll.u32 %s188_s0, 4  ;;  %s117_s1 = int_to_ptr.vmem [resolvable:$true] %s116_s1 }
  0x15   :  { %68 = vst.msk [vmem:[#allocation2] sm:$0x3] %vm66_vm0, %v187_v1  ;;  %s160_s24 = scalar_lea.vmem %s117_s1, 128  ;;  %p165_p9 = scmp.lt.s32.totalorder %s117_s1, %s117_s1 }
  0x16   :  { %v72_v5 = vmul.f32 %v71_v4, %v71_v4  ;;  %v87_v9 = vsub.s32 0, %v86_v8  ;;  %v91_v10 = vsub.s32 1, %v86_v8  ;;  %p161_p8 = scmp.ne.s32.totalorder %s117_s1, %s160_s24  ;;  %p166_p10 = scmp.lt.s32.totalorder %s160_s24, %s160_s24 }
  0x18   :  { %p167_p11 = por %p166_p10, %p165_p9 }
  0x1a   :  { %p168_p12 = pnand %p167_p11, %p161_p8 }
  0x1c   :  { %v73_v6 = vld [vmem:[#allocation2] sm:$0x3] }
  0x1d   :  { %v74_v7 = vadd.f32 %v73_v6, %v72_v5 }
  0x1f   :  { %79 = vst.msk [vmem:[#allocation2] sm:$0x3] %vm66_vm0, %v74_v7 }
  0x26   :  { %v83_v11 = vld [vmem:[#allocation2] sm:$0x3] }
  0x27   :  { %v88_v12 = vrot.slane %v83_v11, %v87_v9  ;;  %v92_v13 = vrot.slane %v83_v11, %v91_v10 }
  0x29   :  { %v96_v14 = vsel %vm95_vm1, %v88_v12, 0.0  ;;  %v97_v15 = vsel %vm95_vm1, %v92_v13, 0.0 }
  0x2a   :  { %v98_v16 = vadd.f32 %v97_v15, %v96_v14 }
  0x2c   :  { %99 = vadd.xlane.f32.xlu0 %v98_v16 }
  0xb9   :  { %v100_v17 = vpop.xlane.xlu0 %99 }
  0xba   :  { %v101_v18 = vrot.slane %v100_v17, 4 }
  0xbc   :  { %v102_v19 = vadd.f32 %v101_v18, %v100_v17 }
  0xbe   :  { %v103_v20 = vrot.slane %v102_v19, 2 }
  0xc0   :  { %v104_v21 = vadd.f32 %v103_v20, %v102_v19 }
  0xc2   :  { %v105_v22 = vrot.slane %v104_v21, 1 }
  0xc4   :  { %v106_v23 = vadd.f32 %v105_v22, %v104_v21 }
  0xc6   :  { %133 = vpush %v106_v23 }
  0xf7   :  { %s134_s23 = spop %133 }
  0xf8   :  { %v108_v24 = vstv %s134_s23 }
  0xf9   :  { %109 = vst [vmem:[#allocation6] sm:$0xff] %v108_v24 }
  0xfa   :  { %171 = shalt.err (!%p168_p12)
}
  0xfb   :  { %s172_s27 = scalar_lea.hbm %s233_s2, 128 }
  0xfc   :  { %p173_p13 = scmp.ne.s32.totalorder %s233_s2, %s172_s27  ;;  %p176_p0 = scmp.lt.u32.totalorder %s172_s27, %s233_s2 }
  0xfe   :  { %p178_p1 = pnand %p176_p0, %p173_p13 }
 0x100   :  { %181 = shalt.err (!%p178_p1)
}
 0x101   :  { %119 = dma.vmem_to_hbm [thread:$0]  %s117_s1, 128, %s233_s2, [#allocation5]  }
 0x102   :  { %184 = dma.done.wait [#allocation5], 128  }
 0x103   :  { %185 = vsyncadd [#allocation5], 4294967168 }
 0x104   :  { %123 = vsyncpa [#allocation4], 1 }
 0x105   :  { %124 = vsyncpa [#allocation5], 1 }

</bundles_post_ra>
